<compile_context>
chip_gen: v6e
topology: v6e:2x2x1
jax: 0.10.0
libtpu: 0.0.40
codegen_flags: <defaults>
</compile_context>

<pallas_src>
import jax
import jax.numpy as jnp
from jax.experimental import pallas as pl
from jax.experimental.pallas import tpu as pltpu

HIDDEN = 128


def _round_up(n, m):
    return ((n + m - 1) // m) * m


def _cdiv(a, b):
    return (a + b - 1) // b


def _choose_batch_tile(B, tb_max=1024):
    """Batch tile: multiple of 8, <= tb_max, minimal tail padding, and >=2
    blocks for moderately large batches (feeds both v7x TensorCores via the
    'parallel' grid axis)."""
    if B <= 128:
        return B                      # single block, full batch dim (always legal)
    nb = max(2, _cdiv(B, tb_max))     # >= 2 blocks for megacore sharding
    return _round_up(_cdiv(B, nb), 8)


def _qnet_kernel(x_ref, w1_ref, w2_ref, w3_ref, b_ref, o_ref):
    """One batch tile: 3 MXU matmuls fused with VPU bias-add + ReLU."""
    hidden = w1_ref.shape[-1]
    na8 = o_ref.shape[-1]
    cdt = w1_ref.dtype                # MXU operand dtype (bf16 or f32)

    b = b_ref[...]                    # (3, P) float32 — one DMA for all biases
    b1 = b[0:1, :hidden]
    b2 = b[1:2, :hidden]
    b3 = b[2:3, :na8]

    x = x_ref[...].astype(cdt)
    h1 = jnp.dot(x, w1_ref[...], preferred_element_type=jnp.float32) + b1
    h1 = jnp.maximum(h1, 0.0)
    h2 = jnp.dot(h1.astype(cdt), w2_ref[...], preferred_element_type=jnp.float32) + b2
    h2 = jnp.maximum(h2, 0.0)
    out = jnp.dot(h2.astype(cdt), w3_ref[...], preferred_element_type=jnp.float32) + b3
    o_ref[...] = out.astype(o_ref.dtype)


def prepare_params(params, *, weight_dtype=jnp.bfloat16):
    """One-time parameter preparation (do NOT call per forward step).

    params: dict of w1,b1,w2,b2,w3,b3 with weights stored (in_features,
    out_features) and biases (1, out_features), all float32.
    """
    w1, b1, w2, b2, w3, b3 = (params[k] for k in ("w1", "b1", "w2", "b2", "w3", "b3"))
    input_dim, hidden = w1.shape
    num_actions = w3.shape[1]
    na8 = _round_up(num_actions, 8)       # 2x pad max, not 32x
    pdim = max(hidden, na8)

    w1c = w1.astype(weight_dtype)
    w2c = w2.astype(weight_dtype)
    w3p = jnp.zeros((hidden, na8), weight_dtype).at[:, :num_actions].set(
        w3.astype(weight_dtype))

    b_packed = jnp.zeros((3, pdim), jnp.float32)
    b_packed = b_packed.at[0, :hidden].set(b1.reshape(-1))
    b_packed = b_packed.at[1, :hidden].set(b2.reshape(-1))
    b_packed = b_packed.at[2, :num_actions].set(b3.reshape(-1))

    return {
        "w1": w1c, "w2": w2c, "w3": w3p, "b": b_packed,
        "input_dim": input_dim, "hidden": hidden,
        "num_actions": num_actions, "na8": na8, "pdim": pdim,
    }


def qnetwork_forward(x, prepared, *, tb_max=1024):
    """x: (B, input_dim) float32.  prepared: output of prepare_params()."""
    B, input_dim = x.shape
    assert input_dim == prepared["input_dim"]
    hidden = prepared["hidden"]
    num_actions = prepared["num_actions"]
    na8 = prepared["na8"]
    pdim = prepared["pdim"]
    w1c, w2c, w3p, b_packed = (prepared[k] for k in ("w1", "w2", "w3", "b"))

    tb_eff = _choose_batch_tile(B, tb_max)
    nb = _cdiv(B, tb_eff)                 # last block may be ragged; Pallas clips writeback

    flops = 2 * B * (input_dim * hidden + hidden * hidden + hidden * na8)
    bytes_accessed = int(
        x.size * x.dtype.itemsize
        + w1c.size * w1c.dtype.itemsize
        + w2c.size * w2c.dtype.itemsize
        + w3p.size * w3p.dtype.itemsize
        + b_packed.size * b_packed.dtype.itemsize
        + B * na8 * 4
    )

    out = pl.pallas_call(
        _qnet_kernel,
        out_shape=jax.ShapeDtypeStruct((B, na8), jnp.float32),
        grid=(nb,),
        in_specs=[
            pl.BlockSpec((tb_eff, input_dim), lambda i: (i, 0)),   # x: tiled over batch
            pl.BlockSpec((input_dim, hidden), lambda i: (0, 0)),   # w1: resident
            pl.BlockSpec((hidden, hidden), lambda i: (0, 0)),      # w2: resident
            pl.BlockSpec((hidden, na8), lambda i: (0, 0)),         # w3 (8-padded): resident
            pl.BlockSpec((3, pdim), lambda i: (0, 0)),             # packed biases: resident
        ],
        out_specs=pl.BlockSpec((tb_eff, na8), lambda i: (i, 0)),
        compiler_params=pltpu.CompilerParams(
            dimension_semantics=("parallel",)),
        cost_estimate=pl.CostEstimate(
            flops=int(flops), transcendentals=0, bytes_accessed=bytes_accessed),
    )(x, w1c, w2c, w3p, b_packed)

    if na8 == num_actions:
        return out
    # Tiny slice (8 lanes/row read, num_actions lanes/row written); consumers
    # that tolerate zero-padded trailing columns can take `out` directly.
    return out[:, :num_actions]


def init_params(key, input_dim, num_actions):
    """PyTorch-style default Linear init (uniform +/- 1/sqrt(fan_in)).
    Weights stored as (in_features, out_features)."""
    ks = jax.random.split(key, 6)

    def lin(kw, kb, fan_in, fan_out):
        bound = 1.0 / jnp.sqrt(jnp.float32(fan_in))
        w = jax.random.uniform(kw, (fan_in, fan_out), jnp.float32, -bound, bound)
        b = jax.random.uniform(kb, (1, fan_out), jnp.float32, -bound, bound)
        return w, b

    w1, b1 = lin(ks[0], ks[1], input_dim, HIDDEN)
    w2, b2 = lin(ks[2], ks[3], HIDDEN, HIDDEN)
    w3, b3 = lin(ks[4], ks[5], HIDDEN, num_actions)
    return {"w1": w1, "b1": b1, "w2": w2, "b2": b2, "w3": w3, "b3": b3}


def qnetwork_ref(x, p, *, weight_dtype=jnp.float32):
    """Pure-JAX reference with the same weight-dtype treatment as the kernel."""
    w1 = p["w1"].astype(weight_dtype)
    w2 = p["w2"].astype(weight_dtype)
    w3 = p["w3"].astype(weight_dtype)
    h1 = jnp.dot(x.astype(weight_dtype), w1,
                 preferred_element_type=jnp.float32) + p["b1"]
    h1 = jnp.maximum(h1, 0.0)
    h2 = jnp.dot(h1.astype(weight_dtype), w2,
                 preferred_element_type=jnp.float32) + p["b2"]
    h2 = jnp.maximum(h2, 0.0)
    return jnp.dot(h2.astype(weight_dtype), w3,
                   preferred_element_type=jnp.float32) + p["b3"]


if __name__ == "__main__":
    key = jax.random.PRNGKey(0)
    k_x, k_p = jax.random.split(key)

    batch, input_dim, num_actions = 8, 32, 4
    x = jax.random.normal(k_x, (batch, input_dim), jnp.float32)
    params = init_params(k_p, input_dim, num_actions)

    # One-time parameter preparation (hoisted out of the forward pass).
    prep_bf16 = prepare_params(params, weight_dtype=jnp.bfloat16)
    prep_f32 = prepare_params(params, weight_dtype=jnp.float32)

    # bf16-weight path (default for all generations).
    out_bf16 = jax.block_until_ready(qnetwork_forward(x, prep_bf16))
    ref_bf16 = qnetwork_ref(x, params, weight_dtype=jnp.bfloat16)
    assert out_bf16.shape == (batch, num_actions), out_bf16.shape
    assert jnp.allclose(out_bf16, ref_bf16, atol=1e-3, rtol=1e-3), \
        f"bf16 max abs err {jnp.max(jnp.abs(out_bf16 - ref_bf16))}"

    # f32-weight path (strict operand precision).
    out_f32 = jax.block_until_ready(qnetwork_forward(x, prep_f32))
    ref_f32 = qnetwork_ref(x, params, weight_dtype=jnp.float32)
    assert jnp.allclose(out_f32, ref_f32, atol=1e-4, rtol=1e-4), \
        f"f32 max abs err {jnp.max(jnp.abs(out_f32 - ref_f32))}"

    # Larger batch: 2 parallel grid blocks (v7x megacore) with a ragged tail,
    # no wrapper-side padding of x.
    xb = jax.random.normal(k_x, (600, input_dim), jnp.float32)
    out_b = jax.block_until_ready(qnetwork_forward(xb, prep_bf16))
    ref_b = qnetwork_ref(xb, params, weight_dtype=jnp.bfloat16)
    assert out_b.shape == (600, num_actions), out_b.shape
    assert jnp.allclose(out_b, ref_b, atol=1e-3, rtol=1e-3), \
        f"batched max abs err {jnp.max(jnp.abs(out_b - ref_b))}"

    print("KERNEL_OK")
</pallas_src>

<mosaic_0001>
module attributes {stable_mosaic.version = 11 : i64} {
  func.func @_qnet_kernel(%arg0: i32, %arg1: memref<8x32xf32, #tpu.memory_space<vmem>>, %arg2: memref<32x128xbf16, #tpu.memory_space<vmem>>, %arg3: memref<128x128xbf16, #tpu.memory_space<vmem>>, %arg4: memref<128x8xbf16, #tpu.memory_space<vmem>>, %arg5: memref<3x128xf32, #tpu.memory_space<vmem>>, %arg6: memref<8x8xf32, #tpu.memory_space<vmem>>) attributes {dimension_semantics = [#tpu.dimension_semantics<parallel>], iteration_bounds = array<i64: 1>, scalar_prefetch = 0 : i64, scratch_operands = 0 : i64, tpu.core_type = #tpu.core_type<tc>, window_params = [{transform_indices = @transform_0, window_bounds = array<i64: 8, 32>}, {pipeline_mode = #tpu.pipeline_mode<synchronous>, transform_indices = @transform_1, window_bounds = array<i64: 32, 128>}, {pipeline_mode = #tpu.pipeline_mode<synchronous>, transform_indices = @transform_2, window_bounds = array<i64: 128, 128>}, {pipeline_mode = #tpu.pipeline_mode<synchronous>, transform_indices = @transform_3, window_bounds = array<i64: 128, 8>}, {pipeline_mode = #tpu.pipeline_mode<synchronous>, transform_indices = @transform_4, window_bounds = array<i64: 3, 128>}, {transform_indices = @transform_5, window_bounds = array<i64: 8, 8>}]} {
    %c0 = arith.constant 0 : index
    %c0_0 = arith.constant 0 : index
    %0 = vector.load %arg5[%c0, %c0_0] : memref<3x128xf32, #tpu.memory_space<vmem>>, vector<3x128xf32>
    %1 = vector.extract_strided_slice %0 {offsets = [0, 0], sizes = [1, 128], strides = [1, 1]} : vector<3x128xf32> to vector<1x128xf32>
    %2 = vector.extract_strided_slice %0 {offsets = [1, 0], sizes = [1, 128], strides = [1, 1]} : vector<3x128xf32> to vector<1x128xf32>
    %3 = vector.extract_strided_slice %0 {offsets = [2, 0], sizes = [1, 8], strides = [1, 1]} : vector<3x128xf32> to vector<1x8xf32>
    %c0_1 = arith.constant 0 : index
    %c0_2 = arith.constant 0 : index
    %4 = vector.load %arg1[%c0_1, %c0_2] : memref<8x32xf32, #tpu.memory_space<vmem>>, vector<8x32xf32>
    %5 = arith.truncf %4 : vector<8x32xf32> to vector<8x32xbf16>
    %c0_3 = arith.constant 0 : index
    %c0_4 = arith.constant 0 : index
    %6 = vector.load %arg2[%c0_3, %c0_4] : memref<32x128xbf16, #tpu.memory_space<vmem>>, vector<32x128xbf16>
    %cst = arith.constant dense<0.000000e+00> : vector<8x128xf32>
    %7 = tpu.matmul %5, %6, %cst {dimension_numbers = #tpu.dot_dimension_numbers<[1], [0], [0], [1], [0, 0, 1, 1], [], []>} : vector<8x32xbf16>, vector<32x128xbf16>, vector<8x128xf32> -> vector<8x128xf32>
    %8 = vector.broadcast %1 : vector<1x128xf32> to vector<8x128xf32>
    %9 = arith.addf %7, %8 : vector<8x128xf32>
    %cst_5 = arith.constant 0.000000e+00 : f32
    %10 = vector.broadcast %cst_5 : f32 to vector<8x128xf32>
    %11 = arith.maximumf %9, %10 : vector<8x128xf32>
    %12 = arith.truncf %11 : vector<8x128xf32> to vector<8x128xbf16>
    %c0_6 = arith.constant 0 : index
    %c0_7 = arith.constant 0 : index
    %13 = vector.load %arg3[%c0_6, %c0_7] : memref<128x128xbf16, #tpu.memory_space<vmem>>, vector<128x128xbf16>
    %cst_8 = arith.constant dense<0.000000e+00> : vector<8x128xf32>
    %14 = tpu.matmul %12, %13, %cst_8 {dimension_numbers = #tpu.dot_dimension_numbers<[1], [0], [0], [1], [0, 0, 1, 1], [], []>} : vector<8x128xbf16>, vector<128x128xbf16>, vector<8x128xf32> -> vector<8x128xf32>
    %15 = vector.broadcast %2 : vector<1x128xf32> to vector<8x128xf32>
    %16 = arith.addf %14, %15 : vector<8x128xf32>
    %cst_9 = arith.constant 0.000000e+00 : f32
    %17 = vector.broadcast %cst_9 : f32 to vector<8x128xf32>
    %18 = arith.maximumf %16, %17 : vector<8x128xf32>
    %19 = arith.truncf %18 : vector<8x128xf32> to vector<8x128xbf16>
    %c0_10 = arith.constant 0 : index
    %c0_11 = arith.constant 0 : index
    %20 = vector.load %arg4[%c0_10, %c0_11] : memref<128x8xbf16, #tpu.memory_space<vmem>>, vector<128x8xbf16>
    %cst_12 = arith.constant dense<0.000000e+00> : vector<8x8xf32>
    %21 = tpu.matmul %19, %20, %cst_12 {dimension_numbers = #tpu.dot_dimension_numbers<[1], [0], [0], [1], [0, 0, 1, 1], [], []>} : vector<8x128xbf16>, vector<128x8xbf16>, vector<8x8xf32> -> vector<8x8xf32>
    %22 = vector.broadcast %3 : vector<1x8xf32> to vector<8x8xf32>
    %23 = arith.addf %21, %22 : vector<8x8xf32>
    %c0_13 = arith.constant 0 : index
    %c0_14 = arith.constant 0 : index
    %24 = vector.load %arg6[%c0_13, %c0_14] : memref<8x8xf32, #tpu.memory_space<vmem>>, vector<8x8xf32>
    tpu.vector_store %arg6[%c0_13, %c0_14], %23 {strides = array<i32>} : memref<8x8xf32, #tpu.memory_space<vmem>>, vector<8x8xf32>,
    return
  }
  func.func @transform_0(%arg0: i32) -> (i32, i32) {
    %c0_i32 = arith.constant 0 : i32
    %c0_i32_0 = arith.constant 0 : i32
    return %arg0, %c0_i32 : i32, i32
  }
  func.func @transform_1(%arg0: i32) -> (i32, i32) {
    %c0_i32 = arith.constant 0 : i32
    %c0_i32_0 = arith.constant 0 : i32
    %c0_i32_1 = arith.constant 0 : i32
    return %c0_i32, %c0_i32_0 : i32, i32
  }
  func.func @transform_2(%arg0: i32) -> (i32, i32) {
    %c0_i32 = arith.constant 0 : i32
    %c0_i32_0 = arith.constant 0 : i32
    %c0_i32_1 = arith.constant 0 : i32
    return %c0_i32, %c0_i32_0 : i32, i32
  }
  func.func @transform_3(%arg0: i32) -> (i32, i32) {
    %c0_i32 = arith.constant 0 : i32
    %c0_i32_0 = arith.constant 0 : i32
    %c0_i32_1 = arith.constant 0 : i32
    return %c0_i32, %c0_i32_0 : i32, i32
  }
  func.func @transform_4(%arg0: i32) -> (i32, i32) {
    %c0_i32 = arith.constant 0 : i32
    %c0_i32_0 = arith.constant 0 : i32
    %c0_i32_1 = arith.constant 0 : i32
    return %c0_i32, %c0_i32_0 : i32, i32
  }
  func.func @transform_5(%arg0: i32) -> (i32, i32) {
    %c0_i32 = arith.constant 0 : i32
    %c0_i32_0 = arith.constant 0 : i32
    return %arg0, %c0_i32 : i32, i32
  }
}

</mosaic_0001>

<bundles_post_ra>
// kernel: tpu_custom_call.1
= control target key start
LH: loop header
LB: loop body
LE: loop exit
PB: predicated region body
PF: predicated region fallthrough
CT: control target
= control target key end

     0   :  { %10 = vsyncpa [#allocation3], 0  ;;  %s653_s0 = inlined_call_operand.hbm [shape: f32[8,32], index: 0, kind: input, shape index: {}]   ;;  %s654_s1 = inlined_call_operand.hbm [shape: bf16[32,128], index: 1, kind: input, shape index: {}]   ;;  %s655_s2 = inlined_call_operand.vmem [shape: bf16[128,128], index: 2, kind: input, shape index: {}]   ;;  %s656_s3 = inlined_call_operand.vmem [shape: bf16[128,8], index: 3, kind: input, shape index: {}]   ;;  %s657_s4 = inlined_call_operand.vmem [shape: f32[3,128], index: 4, kind: input, shape index: {}]   ;;  %s658_s5 = inlined_call_operand.hbm [shape: f32[8,8], index: 5, kind: output, shape index: {}]  }
   0x1   :  { %11 = vsyncpa [#allocation6], 0 }
   0x2   :  { %12 = vsyncpa [#allocation4], 0  ;;  %s532_s18 = smov [#allocation2]   ;;  %s533_s20 = smov [#allocation5]  }
   0x3   :  { %s19_s19 = sshll.u32 %s532_s18, 4  ;;  %s28_s21 = sshll.u32 %s533_s20, 4  ;;  %s20_s19 = int_to_ptr.vmem [resolvable:$true] %s19_s19  ;;  %s29_s21 = int_to_ptr.vmem [resolvable:$true] %s28_s21 }
   0x4   :  { %s474_s22 = scalar_lea.vmem %s20_s19, 128  ;;  %p479_p1 = scmp.lt.s32.totalorder %s20_s19, %s20_s19 }
   0x5   :  { %p475_p0 = scmp.ne.s32.totalorder %s20_s19, %s474_s22  ;;  %p480_p2 = scmp.lt.s32.totalorder %s474_s22, %s474_s22 }
   0x7   :  { %p481_p3 = por %p480_p2, %p479_p1 }
   0x9   :  { %p482_p4 = pnand %p481_p3, %p475_p0 }
   0xb   :  { %485 = shalt.err (!%p482_p4)
}
   0xc   :  { %22 = dma.hbm_to_vmem [thread:$0]  %s653_s0, 128, %s20_s19, [#allocation3]  }
   0xd   :  { %s494_s25 = scalar_lea.vmem %s29_s21, 256  ;;  %p499_p6 = scmp.lt.s32.totalorder %s29_s21, %s29_s21 }
   0xe   :  { %p495_p5 = scmp.ne.s32.totalorder %s29_s21, %s494_s25  ;;  %p500_p7 = scmp.lt.s32.totalorder %s494_s25, %s494_s25 }
  0x10   :  { %p501_p8 = por %p500_p7, %p499_p6 }
  0x12   :  { %p502_p9 = pnand %p501_p8, %p495_p5 }
  0x14   :  { %505 = shalt.err (!%p502_p9)
}
  0x15   :  { %s534_s26 = smov 64   ;;  %s535_s27 = smov 4  }
  0x16   :  { %34 = dma.hbm_to_vmem [thread:$0]  %s654_s1, 256, %s29_s21, [#allocation6], %s534_s26, %s534_s26, %s535_s27  }
  0x17   :  { %526 = dma.done.wait [#allocation3], 128  }
  0x18   :  { %527 = vsyncadd [#allocation3], 4294967168 }
  0x19   :  { %528 = dma.done.wait [#allocation6], 256  }
  0x1a   :  { %529 = vsyncadd [#allocation6], 4294967040  ;;  %v536_v0 = vmov 0.0   ;;  %vm537_vm0 = vmmov 0   ;;  %v448_v1 = vld [vmem:[#allocation5 + $0x8] sm:$0xff]   ;;  %v449_v2 = vld [vmem:[#allocation5] sm:$0xff]   ;;  %v55_v19 = vlaneseq }
  0x1b   :  { %393 = vmatprep.subr.bf16.mxu0 %v536_v0  ;;  %397 = vmatprep.mubr.msk.bf16.mxu0 %vm537_vm0, %v536_v0  ;;  %v49_v3 = vld [vmem:[#allocation2] sm:$0xff]  ;;  %v450_v4 = vld [vmem:[%s655_s2 + $0x38] sm:$0xff]   ;;  %v451_v6 = vld [vmem:[%s655_s2 + $0x30] sm:$0xff]   ;;  %vm71_vm1 = vcmask 261120   ;;  %vm335_vm2 = vcmask 64512  }
  0x1c   :  { %401 = vmatprep.subr.bf16.mxu1 %v536_v0  ;;  %417 = vmatprep.mubr.msk.bf16.mxu1 %vm537_vm0, %v536_v0  ;;  %v50_v5 = vpack.c.bf16 %v49_v3, %v49_v3  ;;  %v452_v7 = vld [vmem:[%s655_s2 + $0x28] sm:$0xff]   ;;  %v453_v8 = vld [vmem:[%s655_s2 + $0x20] sm:$0xff]   ;;  %v454_v9 = vld [vmem:[%s655_s2 + $0x18] sm:$0xff]   ;;  %v56_v20 = vshrl.u32 %v55_v19, 7 }
  0x1d   :  { %394 = vmatpush3.bf16.msra.mxu0 %v448_v1  ;;  %402 = vmatpush3.bf16.msra.mxu1 %v450_v4  ;;  %v455_v10 = vld [vmem:[%s655_s2 + $0x10] sm:$0xff]   ;;  %v456_v11 = vld [vmem:[%s655_s2 + $0x8] sm:$0xff]   ;;  %v457_v12 = vld [vmem:[%s655_s2] sm:$0xff]  }
  0x1e   :  { %395 = vmatprep.subr.bf16.mxu0 %v536_v0  ;;  %403 = vmatprep.subr.bf16.mxu1 %v536_v0  ;;  %v458_v13 = vld [vmem:[%s656_s3 + $0x38] sm:$0xff]   ;;  %v459_v14 = vld [vmem:[%s656_s3 + $0x30] sm:$0xff]   ;;  %v460_v15 = vld [vmem:[%s656_s3 + $0x28] sm:$0xff]   ;;  %v57_v21 = vsub.s32 0, %v56_v20  ;;  %v135_v33 = vsub.s32 1, %v56_v20  ;;  %v245_v42 = vsub.s32 2, %v56_v20 }
  0x1f   :  { %v461_v16 = vld [vmem:[%s656_s3 + $0x20] sm:$0xff]   ;;  %v462_v17 = vld [vmem:[%s656_s3 + $0x18] sm:$0xff]   ;;  %v463_v18 = vld [vmem:[%s656_s3 + $0x10] sm:$0xff]  }
  0x20   :  { %v48_v22 = vld [vmem:[%s657_s4] sm:$0x7]  ;;  %v464_v31 = vld [vmem:[%s656_s3 + $0x8] sm:$0xff]   ;;  %s538_s4 = smov [#allocation7]  }
  0x21   :  { %396 = vmatpush3.bf16.msra.mxu0 %v449_v2  ;;  %404 = vmatpush3.bf16.msra.mxu1 %v451_v6  ;;  %v58_v23 = vrot.slane %v48_v22, %v57_v21  ;;  %v465_v32 = vld [vmem:[%s656_s3] sm:$0xff]   ;;  %v136_v34 = vrot.slane %v48_v22, %v135_v33  ;;  %v246_v43 = vrot.slane %v48_v22, %v245_v42  ;;  %s343_s9 = sshll.u32 %s538_s4, 4  ;;  %s344_s9 = int_to_ptr.vmem [resolvable:$true] %s343_s9 }
  0x22   :  { %421 = vmatprep.subr.bf16.mxu0 %v536_v0  ;;  %405 = vmatprep.subr.bf16.mxu1 %v536_v0  ;;  %s506_s3 = scalar_lea.vmem %s344_s9, 128  ;;  %p511_p11 = scmp.lt.s32.totalorder %s344_s9, %s344_s9 }
  0x23   :  { %p507_p10 = scmp.ne.s32.totalorder %s344_s9, %s506_s3  ;;  %p512_p12 = scmp.lt.s32.totalorder %s506_s3, %s506_s3 }
  0x24   :  { %398 = vmatmul.mubr.msk.bf16.vlgmr.msra.gmra.mxu0 %vm71_vm1, %v50_v5 }
  0x25   :  { %437 = vmatprep.mubr.msk.bf16.mxu0 %vm537_vm0, %v536_v0  ;;  %406 = vmatpush3.bf16.msra.mxu1 %v452_v7  ;;  %p513_p13 = por %p512_p12, %p511_p11 }
  0x26   :  { %407 = vmatprep.subr.bf16.mxu1 %v536_v0  ;;  %422 = vmatpush3.bf16.msra.mxu0 %v458_v13 }
  0x27   :  { %423 = vmatprep.subr.bf16.mxu0 %v536_v0  ;;  %p514_p0 = pnand %p513_p13, %p507_p10 }
  0x29   :  { %408 = vmatpush3.bf16.msra.mxu1 %v453_v8 }
  0x2a   :  { %409 = vmatprep.subr.bf16.mxu1 %v536_v0  ;;  %424 = vmatpush3.bf16.msra.mxu0 %v459_v14 }
  0x2b   :  { %425 = vmatprep.subr.bf16.mxu0 %v536_v0 }
  0x2d   :  { %410 = vmatpush3.bf16.msra.mxu1 %v454_v9 }
  0x2e   :  { %411 = vmatprep.subr.bf16.mxu1 %v536_v0  ;;  %426 = vmatpush3.bf16.msra.mxu0 %v460_v15 }
  0x2f   :  { %427 = vmatprep.subr.bf16.mxu0 %v536_v0 }
  0x31   :  { %412 = vmatpush3.bf16.msra.mxu1 %v455_v10 }
  0x32   :  { %413 = vmatprep.subr.bf16.mxu1 %v536_v0  ;;  %428 = vmatpush3.bf16.msra.mxu0 %v461_v16 }
  0x33   :  { %429 = vmatprep.subr.bf16.mxu0 %v536_v0 }
  0x35   :  { %414 = vmatpush3.bf16.msra.mxu1 %v456_v11 }
  0x36   :  { %415 = vmatprep.subr.bf16.mxu1 %v536_v0  ;;  %430 = vmatpush3.bf16.msra.mxu0 %v462_v17 }
  0x37   :  { %431 = vmatprep.subr.bf16.mxu0 %v536_v0 }
  0x39   :  { %416 = vmatpush3.bf16.msra.mxu1 %v457_v12 }
  0x3a   :  { %432 = vmatpush3.bf16.msra.mxu0 %v463_v18 }
  0x3b   :  { %433 = vmatprep.subr.bf16.mxu0 %v536_v0 }
  0x3e   :  { %434 = vmatpush3.bf16.msra.mxu0 %v464_v31 }
  0x3f   :  { %435 = vmatprep.subr.bf16.mxu0 %v536_v0 }
  0x42   :  { %436 = vmatpush3.bf16.msra.mxu0 %v465_v32 }
  0xe4   :  { %v109_v24 = vpop.f32.mrf.mxu0 }
  0xe5   :  { %v110_v25 = vadd.f32 %v109_v24, %v58_v23 }
  0xe6   :  { %v399_v26 = vpop.f32.mrf.mxu0 }
  0xe7   :  { %v115_v27 = vmax.f32 %v110_v25, 0.0 }
  0xe8   :  { %v112_v28 = vpop.f32.mrf.mxu0 }
  0xe9   :  { %v116_v29 = vpack.c.bf16 %v115_v27, %v115_v27 }
  0xea   :  { %v400_v30 = vpop.f32.mrf.mxu0 }
  0xeb   :  { %418 = vmatmul.mubr.bf16.vlgmr.msra.gmra.mxu1 %v116_v29 }
 0x1ab   :  { %v219_v35 = vpop.f32.mrf.mxu1 }
 0x1ac   :  { %v220_v36 = vadd.f32 %v219_v35, %v136_v34 }
 0x1ad   :  { %v419_v37 = vpop.f32.mrf.mxu1 }
 0x1ae   :  { %v225_v38 = vmax.f32 %v220_v36, 0.0 }
 0x1af   :  { %v222_v39 = vpop.f32.mrf.mxu1 }
 0x1b0   :  { %v226_v40 = vpack.c.bf16 %v225_v38, %v225_v38 }
 0x1b1   :  { %v420_v41 = vpop.f32.mrf.mxu1 }
 0x1b2   :  { %438 = vmatmul.mubr.bf16.vlgmr.msra.gmra.mxu0 %v226_v40 }
 0x272   :  { %v329_v44 = vpop.f32.mrf.mxu0 }
 0x273   :  { %v330_v45 = vadd.f32 %v329_v44, %v246_v43 }
 0x274   :  { %v439_v46 = vpop.f32.mrf.mxu0 }
 0x275   :  { %336 = vst.msk [vmem:[#allocation7] sm:$0xff] %vm335_vm2, %v330_v45 }
 0x276   :  { %v332_v47 = vpop.f32.mrf.mxu0 }
 0x277   :  { %517 = shalt.err (!%p514_p0)
}
 0x278   :  { %346 = dma.vmem_to_hbm [thread:$0]  %s344_s9, 128, %s658_s5, [#allocation4]   ;;  %v440_v48 = vpop.f32.mrf.mxu0 }
 0x279   :  { %530 = dma.done.wait [#allocation4], 128  }
 0x27a   :  { %531 = vsyncadd [#allocation4], 4294967168 }
 0x27b   :  { %350 = vsyncpa [#allocation3], 1 }
 0x27c   :  { %351 = vsyncpa [#allocation6], 1 }
 0x27d   :  { %352 = vsyncpa [#allocation4], 1 }

</bundles_post_ra>
